<compile_context>
chip_gen: v6e
topology: v6e:2x2x1
jax: 0.10.0
libtpu: 0.0.40
codegen_flags: <defaults>
</compile_context>

<pallas_src>
import jax
import jax.numpy as jnp
import numpy as np
from jax.experimental import pallas as pl
from jax.experimental.pallas import tpu as pltpu

_LANE = 128


def _time_embedding_kernel(ids_ref, w_ref, out_ref):
    # ids_ref : VMEM (B*T, 1)  int32   -- token ids for the first T timesteps
    # w_ref   : VMEM (V, Dp)   float32 -- embedding table, D padded to 128 lanes
    # out_ref : VMEM (B*T, Dp) float32 -- gathered rows (lane-dense)
    bt = out_ref.shape[0]
    v = w_ref.shape[0]

    ids = ids_ref[...]                                        # (B*T, 1)
    iota_v = jax.lax.broadcasted_iota(jnp.int32, (bt, v), 1)  # (B*T, V)
    onehot = (ids == iota_v).astype(w_ref.dtype)              # exact 0/1 mask

    # One MXU matmul replaces T scalar-indexed row copies; single unmasked
    # lane-dense block store.
    out_ref[...] = jnp.dot(
        onehot, w_ref[...], preferred_element_type=jnp.float32
    ).astype(out_ref.dtype)


def time_embedding(idx, weight, T):
    """out[b, t, :] = weight[idx[b, t], :]  for t in range(T)."""
    B, S = idx.shape
    V, D = weight.shape
    assert S >= T, "sequence length must be >= T (matches the PyTorch loop)"

    # --- wrapper-side layout plumbing (plain XLA, outside the kernel) ---
    # Pad the feature dim to a multiple of 128 lanes for unmasked stores.
    Dp = ((D + _LANE - 1) // _LANE) * _LANE
    w = weight if Dp == D else jnp.pad(weight, ((0, 0), (0, Dp - D)))

    # First T ids, as a (B*T, 1) int32 column.
    ids = idx[:, :T].reshape(B * T, 1).astype(jnp.int32)

    BT = B * T
    # VMEM footprint estimate: table + output + one-hot f32 + iota i32 + ids,
    # with 2x headroom; never below the conservative 16 MiB default.
    est_bytes = (V * Dp * 4) + (BT * Dp * 4) + 2 * (BT * V * 4) + (BT * 128 * 4)
    vmem_limit = max(16 * 1024 * 1024, 2 * est_bytes)

    out2d = pl.pallas_call(
        _time_embedding_kernel,
        out_shape=jax.ShapeDtypeStruct((BT, Dp), weight.dtype),
        in_specs=[
            pl.BlockSpec(memory_space=pltpu.MemorySpace.VMEM),  # ids, whole array
            pl.BlockSpec(memory_space=pltpu.MemorySpace.VMEM),  # padded weight table
        ],
        out_specs=pl.BlockSpec(memory_space=pltpu.MemorySpace.VMEM),
        compiler_params=pltpu.CompilerParams(vmem_limit_bytes=int(vmem_limit)),
    )(ids, w)

    # Slice the lane padding back off and restore (B, T, D).
    if Dp != D:
        out2d = out2d[:, :D]
    return out2d.reshape(B, T, D)


if __name__ == "__main__":
    # Small shapes consistent with the module: wordvec_size=100, T=20, batch=10.
    vocab_size = 128       # corpus-dependent in the original; small stand-in
    wordvec_size = 100
    T = 20
    batch = 10
    seq_len = 25           # >= T

    key = jax.random.PRNGKey(0)
    k_w, k_idx = jax.random.split(key)

    weight = jax.random.normal(k_w, (vocab_size, wordvec_size), dtype=jnp.float32)
    idx = jax.random.randint(k_idx, (batch, seq_len), 0, vocab_size, dtype=jnp.int32)

    out = jax.block_until_ready(time_embedding(idx, weight, T))

    # Reference: plain-JAX gather (same semantics as the torch per-timestep loop).
    ref = weight[idx[:, :T]]
    np.testing.assert_allclose(np.asarray(out), np.asarray(ref), rtol=1e-5, atol=1e-6)
    assert out.shape == (batch, T, wordvec_size)
    assert out.dtype == jnp.float32

    print("KERNEL_OK")
</pallas_src>

<mosaic_0001>
module attributes {stable_mosaic.version = 11 : i64} {
  func.func @_time_embedding_kernel(%arg0: memref<200x1xi32, #tpu.memory_space<vmem>>, %arg1: memref<128x128xf32, #tpu.memory_space<vmem>>, %arg2: memref<200x128xf32, #tpu.memory_space<vmem>>) attributes {dimension_semantics = [], scalar_prefetch = 0 : i64, scratch_operands = 0 : i64, tpu.core_type = #tpu.core_type<tc>} {
    %c0 = arith.constant 0 : index
    %c0_0 = arith.constant 0 : index
    %0 = vector.load %arg0[%c0, %c0_0] : memref<200x1xi32, #tpu.memory_space<vmem>>, vector<200x1xi32>
    %1 = tpu.iota {dimensions = array<i32: 1>} : vector<200x128xi32>
    %2 = vector.broadcast %0 : vector<200x1xi32> to vector<200x128xi32>
    %3 = arith.cmpi eq, %2, %1 : vector<200x128xi32>
    %4 = arith.extui %3 : vector<200x128xi1> to vector<200x128xi32>
    %5 = arith.sitofp %4 : vector<200x128xi32> to vector<200x128xf32>
    %c0_1 = arith.constant 0 : index
    %c0_2 = arith.constant 0 : index
    %6 = vector.load %arg1[%c0_1, %c0_2] : memref<128x128xf32, #tpu.memory_space<vmem>>, vector<128x128xf32>
    %cst = arith.constant dense<0.000000e+00> : vector<200x128xf32>
    %7 = tpu.matmul %5, %6, %cst {dimension_numbers = #tpu.dot_dimension_numbers<[1], [0], [0], [1], [0, 0, 1, 1], [], []>} : vector<200x128xf32>, vector<128x128xf32>, vector<200x128xf32> -> vector<200x128xf32>
    %c0_3 = arith.constant 0 : index
    %c0_4 = arith.constant 0 : index
    %8 = vector.load %arg2[%c0_3, %c0_4] : memref<200x128xf32, #tpu.memory_space<vmem>>, vector<200x128xf32>
    tpu.vector_store %arg2[%c0_3, %c0_4], %7 {strides = array<i32>} : memref<200x128xf32, #tpu.memory_space<vmem>>, vector<200x128xf32>,
    return
  }
}

</mosaic_0001>

<bundles_post_ra>
// kernel: tpu_custom_call.1
= control target key start
LH: loop header
LB: loop body
LE: loop exit
PB: predicated region body
PF: predicated region fallthrough
CT: control target
= control target key end

     0   :  { %v697_v2 = vmov 0   ;;  %v698_v5 = vmov 0.0   ;;  %vm699_vm0 = vmmov 0   ;;  %s979_s0 = inlined_call_operand.vmem [shape: s32[200,1], index: 0, kind: input, shape index: {}]   ;;  %s980_s1 = inlined_call_operand.vmem [shape: f32[128,128], index: 1, kind: input, shape index: {}]   ;;  %s981_s2 = inlined_call_operand.hbm [shape: f32[200,128], index: 2, kind: output, shape index: {}]  }
   0x1   :  { %v25_v0 = vld [vmem:[%s979_s0 + $0x68] sm:$0xff]  ;;  %v12_v1 = vld [vmem:[%s979_s0] sm:$0xff]  ;;  %674 = vset.pattern.permute.xlu1 %v697_v2  ;;  %673 = vset.pattern.permute.xlu0 %v697_v2  ;;  %v14_v3 = vld [vmem:[%s979_s0 + $0x10] sm:$0xff] }
   0x2   :  { %79 = vperm.xlu1 %674, %v25_v0   ;;  %40 = vperm.xlu0 %673, %v12_v1   ;;  %v13_v4 = vld [vmem:[%s979_s0 + $0x8] sm:$0xff]  ;;  %v15_v6 = vld [vmem:[%s979_s0 + $0x18] sm:$0xff]  ;;  %v26_v7 = vld [vmem:[%s979_s0 + $0x70] sm:$0xff] }
   0x3   :  { %527 = vmatprep.subr.mxu0 %v698_v5  ;;  %634 = vmatprep.subr.mxu1 %v698_v5  ;;  %v204_v8 = vld [vmem:[%s980_s1 + $0x78] sm:$0xff]  ;;  %v203_v9 = vld [vmem:[%s980_s1 + $0x70] sm:$0xff]  ;;  %v16_v10 = vld [vmem:[%s979_s0 + $0x20] sm:$0xff] }
   0x4   :  { %559 = vmatprep.mubr.msk.f32.mxu0 %vm699_vm0, %v698_v5  ;;  %598 = vmatprep.mubr.msk.f32.mxu1 %vm699_vm0, %v698_v5  ;;  %v27_v11 = vld [vmem:[%s979_s0 + $0x78] sm:$0xff]  ;;  %v202_v12 = vld [vmem:[%s980_s1 + $0x68] sm:$0xff] }
   0x5   :  { %528 = vmatpush3.msra.mxu0 %v204_v8  ;;  %650 = vmatpush3.msra.mxu1 %v204_v8 }
   0x6   :  { %46 = vperm.xlu1 %674, %v14_v3   ;;  %43 = vperm.xlu0 %673, %v13_v4  }
   0x7   :  { %529 = vmatprep.subr.mxu0 %v698_v5  ;;  %635 = vmatprep.subr.mxu1 %v698_v5 }
   0x8   :  { %530 = vmatpush3.msra.mxu0 %v203_v9  ;;  %651 = vmatpush3.msra.mxu1 %v203_v9 }
   0x9   :  { %531 = vmatprep.subr.mxu0 %v698_v5  ;;  %636 = vmatprep.subr.mxu1 %v698_v5 }
   0xa   :  { %49 = vperm.xlu1 %674, %v15_v6   ;;  %82 = vperm.xlu0 %673, %v26_v7  }
   0xb   :  { %7 = vsyncpa [#allocation3], 0  ;;  %v201_v13 = vld [vmem:[%s980_s1 + $0x60] sm:$0xff]  ;;  %v17_v14 = vld [vmem:[%s979_s0 + $0x28] sm:$0xff]  ;;  %532 = vmatpush3.msra.mxu0 %v202_v12  ;;  %652 = vmatpush3.msra.mxu1 %v202_v12  ;;  %v37_v43 = vlaneseq  ;;  %v700_v47 = vmov 1.0  }
   0xc   :  { %v28_v15 = vld [vmem:[%s979_s0 + $0x80] sm:$0xff]  ;;  %533 = vmatprep.subr.mxu0 %v698_v5  ;;  %637 = vmatprep.subr.mxu1 %v698_v5  ;;  %v200_v16 = vld [vmem:[%s980_s1 + $0x58] sm:$0xff]  ;;  %v18_v17 = vld [vmem:[%s979_s0 + $0x30] sm:$0xff] }
   0xd   :  { %534 = vmatpush3.msra.mxu0 %v201_v13  ;;  %653 = vmatpush3.msra.mxu1 %v201_v13  ;;  %v29_v18 = vld [vmem:[%s979_s0 + $0x88] sm:$0xff]  ;;  %v199_v19 = vld [vmem:[%s980_s1 + $0x50] sm:$0xff]  ;;  %v19_v21 = vld [vmem:[%s979_s0 + $0x38] sm:$0xff]  ;;  %v878_v44 = vand.u32 127, %v37_v43 }
   0xe   :  { %52 = vperm.xlu1 %674, %v16_v10   ;;  %85 = vperm.xlu0 %673, %v27_v11   ;;  %v198_v20 = vld [vmem:[%s980_s1 + $0x48] sm:$0xff]  ;;  %v30_v22 = vld [vmem:[%s979_s0 + $0x90] sm:$0xff]  ;;  %v197_v23 = vld [vmem:[%s980_s1 + $0x40] sm:$0xff] }
   0xf   :  { %535 = vmatprep.subr.mxu0 %v698_v5  ;;  %638 = vmatprep.subr.mxu1 %v698_v5  ;;  %v20_v24 = vld [vmem:[%s979_s0 + $0x40] sm:$0xff]  ;;  %v31_v25 = vld [vmem:[%s979_s0 + $0x98] sm:$0xff]  ;;  %v195_v27 = vld [vmem:[%s980_s1 + $0x30] sm:$0xff] }
  0x10   :  { %536 = vmatpush3.msra.mxu0 %v200_v16  ;;  %654 = vmatpush3.msra.mxu1 %v200_v16  ;;  %v196_v26 = vld [vmem:[%s980_s1 + $0x38] sm:$0xff]  ;;  %v21_v28 = vld [vmem:[%s979_s0 + $0x48] sm:$0xff]  ;;  %v32_v29 = vld [vmem:[%s979_s0 + $0xa0] sm:$0xff] }
  0x11   :  { %537 = vmatprep.subr.mxu0 %v698_v5  ;;  %639 = vmatprep.subr.mxu1 %v698_v5  ;;  %v194_v30 = vld [vmem:[%s980_s1 + $0x28] sm:$0xff]  ;;  %v22_v31 = vld [vmem:[%s979_s0 + $0x50] sm:$0xff]  ;;  %v193_v33 = vld [vmem:[%s980_s1 + $0x20] sm:$0xff] }
  0x12   :  { %55 = vperm.xlu1 %674, %v17_v14   ;;  %88 = vperm.xlu0 %673, %v28_v15   ;;  %v33_v32 = vld [vmem:[%s979_s0 + $0xa8] sm:$0xff]  ;;  %v192_v34 = vld [vmem:[%s980_s1 + $0x18] sm:$0xff]  ;;  %v34_v36 = vld [vmem:[%s979_s0 + $0xb0] sm:$0xff] }
  0x13   :  { %538 = vmatpush3.msra.mxu0 %v199_v19  ;;  %655 = vmatpush3.msra.mxu1 %v199_v19  ;;  %v23_v35 = vld [vmem:[%s979_s0 + $0x58] sm:$0xff]  ;;  %v191_v37 = vld [vmem:[%s980_s1 + $0x10] sm:$0xff]  ;;  %v24_v38 = vld [vmem:[%s979_s0 + $0x60] sm:$0xff] }
  0x14   :  { %539 = vmatprep.subr.mxu0 %v698_v5  ;;  %640 = vmatprep.subr.mxu1 %v698_v5  ;;  %v35_v39 = vld [vmem:[%s979_s0 + $0xb8] sm:$0xff]  ;;  %v190_v40 = vld [vmem:[%s980_s1 + $0x8] sm:$0xff]  ;;  %v189_v41 = vld [vmem:[%s980_s1] sm:$0xff] }
  0x15   :  { %540 = vmatpush3.msra.mxu0 %v198_v20  ;;  %656 = vmatpush3.msra.mxu1 %v198_v20  ;;  %v36_v42 = vld [vmem:[%s979_s0 + $0xc0] sm:$0xff]  ;;  %s701_s0 = smov [#allocation2]  }
  0x16   :  { %58 = vperm.xlu1 %674, %v18_v17   ;;  %91 = vperm.xlu0 %673, %v29_v18   ;;  %s425_s1 = sshll.u32 %s701_s0, 4  ;;  %s426_s1 = int_to_ptr.vmem [resolvable:$true] %s425_s1 }
  0x17   :  { %541 = vmatprep.subr.mxu0 %v698_v5  ;;  %641 = vmatprep.subr.mxu1 %v698_v5  ;;  %s675_s7 = scalar_lea.vmem %s426_s1, 3200  ;;  %p680_p1 = scmp.lt.s32.totalorder %s426_s1, %s426_s1 }
  0x18   :  { %542 = vmatpush3.msra.mxu0 %v197_v23  ;;  %657 = vmatpush3.msra.mxu1 %v197_v23  ;;  %p676_p0 = scmp.ne.s32.totalorder %s426_s1, %s675_s7  ;;  %p681_p2 = scmp.lt.s32.totalorder %s675_s7, %s675_s7 }
  0x19   :  { %543 = vmatprep.subr.mxu0 %v698_v5  ;;  %642 = vmatprep.subr.mxu1 %v698_v5 }
  0x1a   :  { %61 = vperm.xlu1 %674, %v19_v21   ;;  %94 = vperm.xlu0 %673, %v30_v22   ;;  %p682_p3 = por %p681_p2, %p680_p1 }
  0x1b   :  { %544 = vmatpush3.msra.mxu0 %v196_v26  ;;  %658 = vmatpush3.msra.mxu1 %v196_v26 }
  0x1c   :  { %545 = vmatprep.subr.mxu0 %v698_v5  ;;  %643 = vmatprep.subr.mxu1 %v698_v5  ;;  %p683_p4 = pnand %p682_p3, %p676_p0 }
  0x1d   :  { %546 = vmatpush3.msra.mxu0 %v195_v27  ;;  %659 = vmatpush3.msra.mxu1 %v195_v27 }
  0x1e   :  { %64 = vperm.xlu1 %674, %v20_v24   ;;  %97 = vperm.xlu0 %673, %v31_v25  }
  0x1f   :  { %547 = vmatprep.subr.mxu0 %v698_v5  ;;  %644 = vmatprep.subr.mxu1 %v698_v5 }
  0x20   :  { %548 = vmatpush3.msra.mxu0 %v194_v30  ;;  %660 = vmatpush3.msra.mxu1 %v194_v30 }
  0x21   :  { %549 = vmatprep.subr.mxu0 %v698_v5  ;;  %645 = vmatprep.subr.mxu1 %v698_v5 }
  0x22   :  { %67 = vperm.xlu1 %674, %v21_v28   ;;  %100 = vperm.xlu0 %673, %v32_v29  }
  0x23   :  { %550 = vmatpush3.msra.mxu0 %v193_v33  ;;  %661 = vmatpush3.msra.mxu1 %v193_v33 }
  0x24   :  { %551 = vmatprep.subr.mxu0 %v698_v5  ;;  %646 = vmatprep.subr.mxu1 %v698_v5 }
  0x25   :  { %552 = vmatpush3.msra.mxu0 %v192_v34  ;;  %662 = vmatpush3.msra.mxu1 %v192_v34 }
  0x26   :  { %70 = vperm.xlu1 %674, %v22_v31   ;;  %103 = vperm.xlu0 %673, %v33_v32  }
  0x27   :  { %553 = vmatprep.subr.mxu0 %v698_v5  ;;  %647 = vmatprep.subr.mxu1 %v698_v5 }
  0x28   :  { %554 = vmatpush3.msra.mxu0 %v191_v37  ;;  %663 = vmatpush3.msra.mxu1 %v191_v37 }
  0x29   :  { %555 = vmatprep.subr.mxu0 %v698_v5  ;;  %648 = vmatprep.subr.mxu1 %v698_v5 }
  0x2a   :  { %73 = vperm.xlu1 %674, %v23_v35   ;;  %106 = vperm.xlu0 %673, %v34_v36  }
  0x2b   :  { %556 = vmatpush3.msra.mxu0 %v190_v40  ;;  %664 = vmatpush3.msra.mxu1 %v190_v40 }
  0x2c   :  { %557 = vmatprep.subr.mxu0 %v698_v5  ;;  %649 = vmatprep.subr.mxu1 %v698_v5 }
  0x2d   :  { %558 = vmatpush3.msra.mxu0 %v189_v41  ;;  %665 = vmatpush3.msra.mxu1 %v189_v41 }
  0x2e   :  { %76 = vperm.xlu1 %674, %v24_v38   ;;  %109 = vperm.xlu0 %673, %v35_v39  }
  0x32   :  { %112 = vperm.xlu0 %673, %v36_v42  }
  0x7d   :  { %v80_v45 = vpop.permute.xlu1 %79  ;;  %v41_v46 = vpop.permute.xlu0 %40 }
  0x7e   :  { %vm127_vm1 = vcmp.eq.s32.totalorder %v80_v45, %v878_v44  ;;  %vm114_vm2 = vcmp.eq.s32.totalorder %v41_v46, %v878_v44 }
  0x7f   :  { %560 = vmatmul.mubr.msk.f32.vlgmr.msra.gmra.mxu0 %vm114_vm2, %v700_v47  ;;  %599 = vmatmul.mubr.msk.f32.vlgmr.msra.gmra.mxu1 %vm127_vm1, %v700_v47 }
  0x80   :  { %562 = vmatprep.mubr.msk.f32.mxu0 %vm699_vm0, %v698_v5  ;;  %601 = vmatprep.mubr.msk.f32.mxu1 %vm699_vm0, %v698_v5 }
  0x81   :  { %v47_v48 = vpop.permute.xlu1 %46  ;;  %v44_v49 = vpop.permute.xlu0 %43 }
  0x82   :  { %vm115_vm3 = vcmp.eq.s32.totalorder %v44_v49, %v878_v44  ;;  %vm116_vm4 = vcmp.eq.s32.totalorder %v47_v48, %v878_v44 }
  0x83   :  { %563 = vmatmul.mubr.msk.f32.gmra.mxu0 %vm115_vm3, %v700_v47 }
  0x84   :  { %565 = vmatprep.mubr.msk.f32.mxu0 %vm699_vm0, %v698_v5 }
  0x85   :  { %v50_v50 = vpop.permute.xlu1 %49  ;;  %v83_v51 = vpop.permute.xlu0 %82 }
  0x86   :  { %vm128_vm5 = vcmp.eq.s32.totalorder %v83_v51, %v878_v44  ;;  %vm117_vm6 = vcmp.eq.s32.totalorder %v50_v50, %v878_v44 }
  0x87   :  { %566 = vmatmul.mubr.msk.f32.gmra.mxu0 %vm116_vm4, %v700_v47  ;;  %602 = vmatmul.mubr.msk.f32.gmra.mxu1 %vm128_vm5, %v700_v47 }
  0x88   :  { %568 = vmatprep.mubr.msk.f32.mxu0 %vm699_vm0, %v698_v5  ;;  %604 = vmatprep.mubr.msk.f32.mxu1 %vm699_vm0, %v698_v5 }
  0x89   :  { %v53_v52 = vpop.permute.xlu1 %52  ;;  %v86_v53 = vpop.permute.xlu0 %85 }
  0x8a   :  { %vm129_vm7 = vcmp.eq.s32.totalorder %v86_v53, %v878_v44  ;;  %vm118_vm8 = vcmp.eq.s32.totalorder %v53_v52, %v878_v44 }
  0x8b   :  { %569 = vmatmul.mubr.msk.f32.gmra.mxu0 %vm117_vm6, %v700_v47  ;;  %605 = vmatmul.mubr.msk.f32.gmra.mxu1 %vm129_vm7, %v700_v47 }
  0x8c   :  { %571 = vmatprep.mubr.msk.f32.mxu0 %vm699_vm0, %v698_v5  ;;  %607 = vmatprep.mubr.msk.f32.mxu1 %vm699_vm0, %v698_v5 }
  0x8d   :  { %v56_v54 = vpop.permute.xlu1 %55  ;;  %v89_v55 = vpop.permute.xlu0 %88 }
  0x8e   :  { %vm130_vm9 = vcmp.eq.s32.totalorder %v89_v55, %v878_v44  ;;  %vm119_vm10 = vcmp.eq.s32.totalorder %v56_v54, %v878_v44 }
  0x8f   :  { %572 = vmatmul.mubr.msk.f32.gmra.mxu0 %vm118_vm8, %v700_v47  ;;  %608 = vmatmul.mubr.msk.f32.gmra.mxu1 %vm130_vm9, %v700_v47 }
  0x90   :  { %574 = vmatprep.mubr.msk.f32.mxu0 %vm699_vm0, %v698_v5  ;;  %610 = vmatprep.mubr.msk.f32.mxu1 %vm699_vm0, %v698_v5 }
  0x91   :  { %v59_v56 = vpop.permute.xlu1 %58  ;;  %v92_v57 = vpop.permute.xlu0 %91 }
  0x92   :  { %vm131_vm11 = vcmp.eq.s32.totalorder %v92_v57, %v878_v44  ;;  %vm120_vm12 = vcmp.eq.s32.totalorder %v59_v56, %v878_v44 }
  0x93   :  { %575 = vmatmul.mubr.msk.f32.gmra.mxu0 %vm119_vm10, %v700_v47  ;;  %611 = vmatmul.mubr.msk.f32.gmra.mxu1 %vm131_vm11, %v700_v47 }
  0x94   :  { %577 = vmatprep.mubr.msk.f32.mxu0 %vm699_vm0, %v698_v5  ;;  %613 = vmatprep.mubr.msk.f32.mxu1 %vm699_vm0, %v698_v5 }
  0x95   :  { %v62_v58 = vpop.permute.xlu1 %61  ;;  %v95_v59 = vpop.permute.xlu0 %94 }
  0x96   :  { %vm132_vm13 = vcmp.eq.s32.totalorder %v95_v59, %v878_v44  ;;  %vm121_vm14 = vcmp.eq.s32.totalorder %v62_v58, %v878_v44 }
  0x97   :  { %578 = vmatmul.mubr.msk.f32.gmra.mxu0 %vm120_vm12, %v700_v47  ;;  %614 = vmatmul.mubr.msk.f32.gmra.mxu1 %vm132_vm13, %v700_v47 }
  0x98   :  { %580 = vmatprep.mubr.msk.f32.mxu0 %vm699_vm0, %v698_v5  ;;  %616 = vmatprep.mubr.msk.f32.mxu1 %vm699_vm0, %v698_v5 }
  0x99   :  { %v65_v60 = vpop.permute.xlu1 %64  ;;  %v98_v61 = vpop.permute.xlu0 %97 }
  0x9a   :  { %vm133_vm15 = vcmp.eq.s32.totalorder %v98_v61, %v878_v44  ;;  %vm122_vm1 = vcmp.eq.s32.totalorder %v65_v60, %v878_v44 }
  0x9b   :  { %581 = vmatmul.mubr.msk.f32.gmra.mxu0 %vm121_vm14, %v700_v47  ;;  %617 = vmatmul.mubr.msk.f32.gmra.mxu1 %vm133_vm15, %v700_v47 }
  0x9c   :  { %583 = vmatprep.mubr.msk.f32.mxu0 %vm699_vm0, %v698_v5  ;;  %619 = vmatprep.mubr.msk.f32.mxu1 %vm699_vm0, %v698_v5 }
  0x9d   :  { %v68_v62 = vpop.permute.xlu1 %67  ;;  %v101_v63 = vpop.permute.xlu0 %100 }
  0x9e   :  { %vm134_vm2 = vcmp.eq.s32.totalorder %v101_v63, %v878_v44  ;;  %vm123_vm3 = vcmp.eq.s32.totalorder %v68_v62, %v878_v44 }
  0x9f   :  { %584 = vmatmul.mubr.msk.f32.gmra.mxu0 %vm122_vm1, %v700_v47  ;;  %620 = vmatmul.mubr.msk.f32.gmra.mxu1 %vm134_vm2, %v700_v47 }
  0xa0   :  { %586 = vmatprep.mubr.msk.f32.mxu0 %vm699_vm0, %v698_v5  ;;  %622 = vmatprep.mubr.msk.f32.mxu1 %vm699_vm0, %v698_v5 }
  0xa1   :  { %v71_v0 = vpop.permute.xlu1 %70  ;;  %v104_v1 = vpop.permute.xlu0 %103 }
  0xa2   :  { %vm135_vm4 = vcmp.eq.s32.totalorder %v104_v1, %v878_v44  ;;  %vm124_vm5 = vcmp.eq.s32.totalorder %v71_v0, %v878_v44 }
  0xa3   :  { %587 = vmatmul.mubr.msk.f32.gmra.mxu0 %vm123_vm3, %v700_v47  ;;  %623 = vmatmul.mubr.msk.f32.gmra.mxu1 %vm135_vm4, %v700_v47 }
  0xa4   :  { %589 = vmatprep.mubr.msk.f32.mxu0 %vm699_vm0, %v698_v5  ;;  %625 = vmatprep.mubr.msk.f32.mxu1 %vm699_vm0, %v698_v5 }
  0xa5   :  { %v74_v2 = vpop.permute.xlu1 %73  ;;  %v107_v3 = vpop.permute.xlu0 %106 }
  0xa6   :  { %vm136_vm6 = vcmp.eq.s32.totalorder %v107_v3, %v878_v44  ;;  %vm125_vm7 = vcmp.eq.s32.totalorder %v74_v2, %v878_v44 }
  0xa7   :  { %590 = vmatmul.mubr.msk.f32.gmra.mxu0 %vm124_vm5, %v700_v47  ;;  %626 = vmatmul.mubr.msk.f32.gmra.mxu1 %vm136_vm6, %v700_v47 }
  0xa8   :  { %592 = vmatprep.mubr.msk.f32.mxu0 %vm699_vm0, %v698_v5  ;;  %628 = vmatprep.mubr.msk.f32.mxu1 %vm699_vm0, %v698_v5 }
  0xa9   :  { %v110_v4 = vpop.permute.xlu0 %109  ;;  %v77_v6 = vpop.permute.xlu1 %76 }
  0xaa   :  { %vm137_vm8 = vcmp.eq.s32.totalorder %v110_v4, %v878_v44  ;;  %vm126_vm9 = vcmp.eq.s32.totalorder %v77_v6, %v878_v44 }
  0xab   :  { %593 = vmatmul.mubr.msk.f32.gmra.mxu0 %vm125_vm7, %v700_v47  ;;  %629 = vmatmul.mubr.msk.f32.gmra.mxu1 %vm137_vm8, %v700_v47 }
  0xac   :  { %595 = vmatprep.mubr.msk.f32.mxu0 %vm699_vm0, %v698_v5  ;;  %631 = vmatprep.mubr.msk.f32.mxu1 %vm699_vm0, %v698_v5 }
  0xad   :  { %v113_v7 = vpop.permute.xlu0 %112 }
  0xae   :  { %vm138_vm10 = vcmp.eq.s32.totalorder %v113_v7, %v878_v44 }
  0xaf   :  { %596 = vmatmul.mubr.msk.f32.gmra.mxu0 %vm126_vm9, %v700_v47  ;;  %632 = vmatmul.mubr.msk.f32.gmra.mxu1 %vm138_vm10, %v700_v47 }
 0x13f   :  { %v271_v8 = vpop.f32.mrf.mxu0  ;;  %v336_v9 = vpop.f32.mrf.mxu1 }
 0x140   :  { %395 = vst [vmem:[#allocation2] sm:$0xff] %v271_v8  ;;  %408 = vst [vmem:[#allocation2 + $0x68] sm:$0xff] %v336_v9 }
 0x141   :  { %v561_v10 = vpop.f32.mrf.mxu0  ;;  %v600_v11 = vpop.f32.mrf.mxu1 }
 0x143   :  { %v276_v12 = vpop.f32.mrf.mxu0 }
 0x144   :  { %396 = vst [vmem:[#allocation2 + $0x8] sm:$0xff] %v276_v12 }
 0x145   :  { %v564_v13 = vpop.f32.mrf.mxu0 }
 0x147   :  { %v281_v14 = vpop.f32.mrf.mxu0  ;;  %v341_v5 = vpop.f32.mrf.mxu1 }
 0x148   :  { %397 = vst [vmem:[#allocation2 + $0x10] sm:$0xff] %v281_v14  ;;  %409 = vst [vmem:[#allocation2 + $0x70] sm:$0xff] %v341_v5 }
 0x149   :  { %v567_v15 = vpop.f32.mrf.mxu0  ;;  %v603_v16 = vpop.f32.mrf.mxu1 }
 0x14b   :  { %v286_v17 = vpop.f32.mrf.mxu0  ;;  %v346_v18 = vpop.f32.mrf.mxu1 }
 0x14c   :  { %398 = vst [vmem:[#allocation2 + $0x18] sm:$0xff] %v286_v17  ;;  %410 = vst [vmem:[#allocation2 + $0x78] sm:$0xff] %v346_v18 }
 0x14d   :  { %v570_v19 = vpop.f32.mrf.mxu0  ;;  %v606_v20 = vpop.f32.mrf.mxu1 }
 0x14f   :  { %v291_v21 = vpop.f32.mrf.mxu0  ;;  %v351_v22 = vpop.f32.mrf.mxu1 }
 0x150   :  { %399 = vst [vmem:[#allocation2 + $0x20] sm:$0xff] %v291_v21  ;;  %411 = vst [vmem:[#allocation2 + $0x80] sm:$0xff] %v351_v22 }
 0x151   :  { %v573_v23 = vpop.f32.mrf.mxu0  ;;  %v609_v24 = vpop.f32.mrf.mxu1 }
 0x153   :  { %v296_v25 = vpop.f32.mrf.mxu0  ;;  %v356_v26 = vpop.f32.mrf.mxu1 }
 0x154   :  { %400 = vst [vmem:[#allocation2 + $0x28] sm:$0xff] %v296_v25  ;;  %412 = vst [vmem:[#allocation2 + $0x88] sm:$0xff] %v356_v26 }
 0x155   :  { %v576_v27 = vpop.f32.mrf.mxu0  ;;  %v612_v28 = vpop.f32.mrf.mxu1 }
 0x157   :  { %v301_v29 = vpop.f32.mrf.mxu0  ;;  %v361_v30 = vpop.f32.mrf.mxu1 }
 0x158   :  { %401 = vst [vmem:[#allocation2 + $0x30] sm:$0xff] %v301_v29  ;;  %413 = vst [vmem:[#allocation2 + $0x90] sm:$0xff] %v361_v30 }
 0x159   :  { %v579_v31 = vpop.f32.mrf.mxu0  ;;  %v615_v32 = vpop.f32.mrf.mxu1 }
 0x15b   :  { %v306_v33 = vpop.f32.mrf.mxu0  ;;  %v366_v34 = vpop.f32.mrf.mxu1 }
 0x15c   :  { %402 = vst [vmem:[#allocation2 + $0x38] sm:$0xff] %v306_v33  ;;  %414 = vst [vmem:[#allocation2 + $0x98] sm:$0xff] %v366_v34 }
 0x15d   :  { %v582_v35 = vpop.f32.mrf.mxu0  ;;  %v618_v36 = vpop.f32.mrf.mxu1 }
 0x15f   :  { %v311_v37 = vpop.f32.mrf.mxu0  ;;  %v371_v38 = vpop.f32.mrf.mxu1 }
 0x160   :  { %403 = vst [vmem:[#allocation2 + $0x40] sm:$0xff] %v311_v37  ;;  %415 = vst [vmem:[#allocation2 + $0xa0] sm:$0xff] %v371_v38 }
 0x161   :  { %v585_v39 = vpop.f32.mrf.mxu0  ;;  %v621_v40 = vpop.f32.mrf.mxu1 }
 0x163   :  { %v316_v41 = vpop.f32.mrf.mxu0  ;;  %v376_v42 = vpop.f32.mrf.mxu1 }
 0x164   :  { %404 = vst [vmem:[#allocation2 + $0x48] sm:$0xff] %v316_v41  ;;  %416 = vst [vmem:[#allocation2 + $0xa8] sm:$0xff] %v376_v42 }
 0x165   :  { %v588_v43 = vpop.f32.mrf.mxu0  ;;  %v624_v44 = vpop.f32.mrf.mxu1 }
 0x167   :  { %v321_v45 = vpop.f32.mrf.mxu0  ;;  %v381_v46 = vpop.f32.mrf.mxu1 }
 0x168   :  { %405 = vst [vmem:[#allocation2 + $0x50] sm:$0xff] %v321_v45  ;;  %417 = vst [vmem:[#allocation2 + $0xb0] sm:$0xff] %v381_v46 }
 0x169   :  { %v591_v47 = vpop.f32.mrf.mxu0  ;;  %v627_v48 = vpop.f32.mrf.mxu1 }
 0x16b   :  { %v326_v49 = vpop.f32.mrf.mxu0  ;;  %v386_v50 = vpop.f32.mrf.mxu1 }
 0x16c   :  { %406 = vst [vmem:[#allocation2 + $0x58] sm:$0xff] %v326_v49  ;;  %418 = vst [vmem:[#allocation2 + $0xb8] sm:$0xff] %v386_v50 }
 0x16d   :  { %v594_v51 = vpop.f32.mrf.mxu0  ;;  %v630_v52 = vpop.f32.mrf.mxu1 }
 0x16f   :  { %v331_v53 = vpop.f32.mrf.mxu0  ;;  %v391_v54 = vpop.f32.mrf.mxu1 }
 0x170   :  { %407 = vst [vmem:[#allocation2 + $0x60] sm:$0xff] %v331_v53  ;;  %419 = vst [vmem:[#allocation2 + $0xc0] sm:$0xff] %v391_v54 }
 0x171   :  { %v597_v55 = vpop.f32.mrf.mxu0  ;;  %v633_v56 = vpop.f32.mrf.mxu1 }
 0x172   :  { %686 = shalt.err (!%p683_p4)
}
 0x173   :  { %s702_s8 = smov 128   ;;  %s703_s9 = smov 8  }
 0x174   :  { %431 = dma.vmem_to_hbm [thread:$0]  %s426_s1, 3200, %s981_s2, [#allocation3], %s702_s8, %s702_s8, %s703_s9  }
 0x175   :  { %695 = dma.done.wait [#allocation3], 3200  }
 0x176   :  { %696 = vsyncadd [#allocation3], 4294964096 }
 0x177   :  { %435 = vsyncpa [#allocation3], 1 }

</bundles_post_ra>
